<compile_context>
chip_gen: v5e
topology: v5e:2x2
jax: 0.10.0
libtpu: 0.0.40
codegen_flags: <defaults>
</compile_context>

<pallas_src>
import functools

import jax
import jax.numpy as jnp
from jax.experimental import pallas as pl
from jax.experimental.pallas import tpu as pltpu


def _round_up(x, m):
    return (x + m - 1) // m * m


# ------------------------------------------------------------------
# Fused Conv2d (as one matmul) + folded-BN + ReLU kernel
# ------------------------------------------------------------------
def _conv_bn_relu_kernel(lhs_ref, w_ref, s_ref, b_ref, o_ref):
    """One grid step == one MXU matmul + BN/ReLU epilogue.

    lhs_ref: (tile_m, K_p)    bf16  im2col rows (lane-dense, K_p % 128 == 0)
    w_ref  : (K_p,   Cout_p)  bf16  flattened conv weights (taps folded into K)
    s_ref  : (1,     Cout_p)  f32   folded BN scale
    b_ref  : (1,     Cout_p)  f32   folded BN bias (includes conv bias)
    o_ref  : (tile_m, Cout_p) bf16  lane-dense output slab
    """
    acc = jnp.dot(lhs_ref[...], w_ref[...], preferred_element_type=jnp.float32)
    y = acc * s_ref[...] + b_ref[...]               # f32 epilogue (no bf16 VPU on v5e)
    o_ref[...] = jnp.maximum(y, 0.0).astype(o_ref.dtype)


def conv_block_forward(params, x_nchw, *, stride, padding, eps=1e-5):
    """relu(BatchNorm2d(Conv2d(x))) -- NCHW in, NCHW out (matches the PyTorch module)."""
    w = params["conv_w"]                              # (k, k, Cin, Cout) HWIO
    k = int(w.shape[0])
    cin, cout = int(w.shape[2]), int(w.shape[3])
    n, cin_x, h, wd = x_nchw.shape
    assert cin_x == cin
    s, p = int(stride), int(padding)

    ho = (h + 2 * p - k) // s + 1
    wo = (wd + 2 * p - k) // s + 1
    assert ho > 0 and wo > 0

    kk_cin = k * k * cin
    k_pad = _round_up(kk_cin, 128)                    # fills one v5e MXU pass exactly
    cout_p = _round_up(cout, 128)                     # lane-dense output channels

    m_total = n * ho * wo
    # Big M tiles (<=256 rows keeps vreg pressure sane) but >=2 grid steps when
    # possible so both v7x TensorCores get work; serial loop on v5e/v6e.
    tile_m = max(16, min(256, _round_up(pl.cdiv(m_total, 2), 16)))
    grid_m = pl.cdiv(m_total, tile_m)
    m_pad = grid_m * tile_m

    # ---- fold eval-mode BatchNorm + conv bias into per-channel scale / bias.
    scale = params["bn_gamma"] * jax.lax.rsqrt(params["bn_var"] + eps)
    bias = (params["conv_b"] - params["bn_mean"]) * scale + params["bn_beta"]
    scale_p = jnp.zeros((1, cout_p), jnp.float32).at[0, :cout].set(scale)
    bias_p = jnp.zeros((1, cout_p), jnp.float32).at[0, :cout].set(bias)

    # ---- weights: fold taps into the contraction dim ((ky, kx, cin) order), pad, bf16.
    w_mat = jnp.zeros((k_pad, cout_p), jnp.float32)
    w_mat = w_mat.at[:kk_cin, :cout].set(w.reshape(kk_cin, cout))
    w_mat = w_mat.astype(jnp.bfloat16)

    # ---- wrapper-side im2col (tiny problem): lane-dense (M_pad, K_pad) bf16 LHS.
    x_nhwc = jnp.transpose(x_nchw, (0, 2, 3, 1))      # (N, H, W, Cin)
    x_padded = jnp.pad(x_nhwc, ((0, 0), (p, p), (p, p), (0, 0)))
    taps = []
    for ky in range(k):                               # static slices, tap order = (ky, kx, cin)
        for kx in range(k):
            taps.append(x_padded[:, ky:ky + s * (ho - 1) + 1:s,
                                    kx:kx + s * (wo - 1) + 1:s, :])
    lhs = jnp.concatenate(taps, axis=-1).reshape(m_total, kk_cin)
    lhs = jnp.pad(lhs, ((0, m_pad - m_total), (0, k_pad - kk_cin))).astype(jnp.bfloat16)

    out = pl.pallas_call(
        _conv_bn_relu_kernel,
        out_shape=jax.ShapeDtypeStruct((m_pad, cout_p), jnp.bfloat16),
        grid=(grid_m,),
        in_specs=[
            pl.BlockSpec((tile_m, k_pad), lambda i: (i, 0)),
            pl.BlockSpec((k_pad, cout_p), lambda i: (0, 0)),
            pl.BlockSpec((1, cout_p), lambda i: (0, 0)),
            pl.BlockSpec((1, cout_p), lambda i: (0, 0)),
        ],
        out_specs=pl.BlockSpec((tile_m, cout_p), lambda i: (i, 0)),
        compiler_params=pltpu.CompilerParams(dimension_semantics=("parallel",)),
    )(lhs, w_mat, scale_p, bias_p)

    out = out[:m_total, :cout].reshape(n, ho, wo, cout)       # drop M / lane padding
    return jnp.transpose(out, (0, 3, 1, 2)).astype(jnp.float32)  # NHWC -> NCHW, f32 out


# ------------------------------------------------------------------
# Pure-JAX f32 reference (loose numeric self-check) and param init
# ------------------------------------------------------------------
def _conv_bn_relu_reference(params, x_nchw, *, stride, padding, eps=1e-5):
    y = jax.lax.conv_general_dilated(
        x_nchw.astype(jnp.float32), params["conv_w"],
        window_strides=(stride, stride),
        padding=((padding, padding), (padding, padding)),
        dimension_numbers=("NCHW", "HWIO", "NCHW"))
    y = y + params["conv_b"][None, :, None, None]
    scale = params["bn_gamma"] * jax.lax.rsqrt(params["bn_var"] + eps)
    y = (y - params["bn_mean"][None, :, None, None]) * scale[None, :, None, None] \
        + params["bn_beta"][None, :, None, None]
    return jnp.maximum(y, 0.0)


def init_params(key, in_channels, out_channels, kernel_size):
    ks = jax.random.split(key, 6)
    k = kernel_size
    return {
        "conv_w": 0.1 * jax.random.normal(ks[0], (k, k, in_channels, out_channels), jnp.float32),
        "conv_b": 0.1 * jax.random.normal(ks[1], (out_channels,), jnp.float32),
        "bn_gamma": jax.random.uniform(ks[2], (out_channels,), jnp.float32, 0.5, 1.5),
        "bn_beta": 0.1 * jax.random.normal(ks[3], (out_channels,), jnp.float32),
        "bn_mean": 0.1 * jax.random.normal(ks[4], (out_channels,), jnp.float32),
        "bn_var": jax.random.uniform(ks[5], (out_channels,), jnp.float32, 0.5, 1.5),
    }


if __name__ == "__main__":
    key = jax.random.PRNGKey(0)
    pkey, xkey = jax.random.split(key)

    # conv_block(in_channels=4, out_channels=32, kernel_size=3, stride=2, padding=1)
    in_channels, out_channels, kernel_size, stride, padding = 4, 32, 3, 2, 1
    params = init_params(pkey, in_channels, out_channels, kernel_size)
    x = jax.random.normal(xkey, (2, in_channels, 16, 16), jnp.float32)   # NCHW like PyTorch

    fwd = jax.jit(functools.partial(conv_block_forward, stride=stride, padding=padding))
    out = jax.block_until_ready(fwd(params, x))

    assert out.shape == (2, out_channels, 8, 8), out.shape
    assert bool(jnp.all(jnp.isfinite(out)))

    # Loose numeric check vs an f32 reference (kernel uses bf16 MXU operands + bf16 store).
    ref = _conv_bn_relu_reference(params, x, stride=stride, padding=padding)
    rel = jnp.linalg.norm(out - ref) / (jnp.linalg.norm(ref) + 1e-6)
    assert float(rel) < 2e-2, float(rel)

    print("KERNEL_OK")
</pallas_src>

<mosaic_0001>
module attributes {stable_mosaic.version = 11 : i64} {
  func.func @_conv_bn_relu_kernel(%arg0: i32, %arg1: memref<64x128xbf16, #tpu.memory_space<vmem>>, %arg2: memref<128x128xbf16, #tpu.memory_space<vmem>>, %arg3: memref<1x128xf32, #tpu.memory_space<vmem>>, %arg4: memref<1x128xf32, #tpu.memory_space<vmem>>, %arg5: memref<64x128xbf16, #tpu.memory_space<vmem>>) attributes {dimension_semantics = [#tpu.dimension_semantics<parallel>], iteration_bounds = array<i64: 2>, scalar_prefetch = 0 : i64, scratch_operands = 0 : i64, tpu.core_type = #tpu.core_type<tc>, window_params = [{transform_indices = @transform_0, window_bounds = array<i64: 64, 128>}, {pipeline_mode = #tpu.pipeline_mode<synchronous>, transform_indices = @transform_1, window_bounds = array<i64: 128, 128>}, {pipeline_mode = #tpu.pipeline_mode<synchronous>, transform_indices = @transform_2, window_bounds = array<i64: 1, 128>}, {pipeline_mode = #tpu.pipeline_mode<synchronous>, transform_indices = @transform_3, window_bounds = array<i64: 1, 128>}, {transform_indices = @transform_4, window_bounds = array<i64: 64, 128>}]} {
    %c0 = arith.constant 0 : index
    %c0_0 = arith.constant 0 : index
    %0 = vector.load %arg1[%c0, %c0_0] : memref<64x128xbf16, #tpu.memory_space<vmem>>, vector<64x128xbf16>
    %c0_1 = arith.constant 0 : index
    %c0_2 = arith.constant 0 : index
    %1 = vector.load %arg2[%c0_1, %c0_2] : memref<128x128xbf16, #tpu.memory_space<vmem>>, vector<128x128xbf16>
    %cst = arith.constant dense<0.000000e+00> : vector<64x128xf32>
    %2 = tpu.matmul %0, %1, %cst {dimension_numbers = #tpu.dot_dimension_numbers<[1], [0], [0], [1], [0, 0, 1, 1], [], []>} : vector<64x128xbf16>, vector<128x128xbf16>, vector<64x128xf32> -> vector<64x128xf32>
    %c0_3 = arith.constant 0 : index
    %c0_4 = arith.constant 0 : index
    %3 = vector.load %arg3[%c0_3, %c0_4] : memref<1x128xf32, #tpu.memory_space<vmem>>, vector<1x128xf32>
    %4 = vector.broadcast %3 : vector<1x128xf32> to vector<64x128xf32>
    %5 = arith.mulf %2, %4 : vector<64x128xf32>
    %c0_5 = arith.constant 0 : index
    %c0_6 = arith.constant 0 : index
    %6 = vector.load %arg4[%c0_5, %c0_6] : memref<1x128xf32, #tpu.memory_space<vmem>>, vector<1x128xf32>
    %7 = vector.broadcast %6 : vector<1x128xf32> to vector<64x128xf32>
    %8 = arith.addf %5, %7 : vector<64x128xf32>
    %cst_7 = arith.constant 0.000000e+00 : f32
    %9 = vector.broadcast %cst_7 : f32 to vector<64x128xf32>
    %10 = arith.maximumf %8, %9 : vector<64x128xf32>
    %11 = arith.truncf %10 : vector<64x128xf32> to vector<64x128xbf16>
    %c0_8 = arith.constant 0 : index
    %c0_9 = arith.constant 0 : index
    %12 = vector.load %arg5[%c0_8, %c0_9] : memref<64x128xbf16, #tpu.memory_space<vmem>>, vector<64x128xbf16>
    tpu.vector_store %arg5[%c0_8, %c0_9], %11 {strides = array<i32>} : memref<64x128xbf16, #tpu.memory_space<vmem>>, vector<64x128xbf16>,
    return
  }
  func.func @transform_0(%arg0: i32) -> (i32, i32) {
    %c0_i32 = arith.constant 0 : i32
    %c0_i32_0 = arith.constant 0 : i32
    return %arg0, %c0_i32 : i32, i32
  }
  func.func @transform_1(%arg0: i32) -> (i32, i32) {
    %c0_i32 = arith.constant 0 : i32
    %c0_i32_0 = arith.constant 0 : i32
    %c0_i32_1 = arith.constant 0 : i32
    return %c0_i32, %c0_i32_0 : i32, i32
  }
  func.func @transform_2(%arg0: i32) -> (i32, i32) {
    %c0_i32 = arith.constant 0 : i32
    %c0_i32_0 = arith.constant 0 : i32
    %c0_i32_1 = arith.constant 0 : i32
    return %c0_i32, %c0_i32_0 : i32, i32
  }
  func.func @transform_3(%arg0: i32) -> (i32, i32) {
    %c0_i32 = arith.constant 0 : i32
    %c0_i32_0 = arith.constant 0 : i32
    %c0_i32_1 = arith.constant 0 : i32
    return %c0_i32, %c0_i32_0 : i32, i32
  }
  func.func @transform_4(%arg0: i32) -> (i32, i32) {
    %c0_i32 = arith.constant 0 : i32
    %c0_i32_0 = arith.constant 0 : i32
    return %arg0, %c0_i32 : i32, i32
  }
}

</mosaic_0001>

<bundles_post_ra>
// kernel: conv_block_forward.1
= control target key start
LH: loop header
LB: loop body
LE: loop exit
PB: predicated region body
PF: predicated region fallthrough
CT: control target
= control target key end

     0   :  { %s591_s15 = smov 0   ;;  %s645_s0 = inlined_call_operand.vmem [shape: bf16[128,128], index: 0, kind: input, shape index: {}]   ;;  %s646_s1 = inlined_call_operand.vmem [shape: bf16[128,128], index: 1, kind: input, shape index: {}]   ;;  %s647_s2 = inlined_call_operand.vmem [shape: f32[1,128], index: 2, kind: input, shape index: {}]   ;;  %s648_s3 = inlined_call_operand.vmem [shape: f32[1,128], index: 3, kind: input, shape index: {}]   ;;  %s649_s4 = inlined_call_operand.vmem [shape: bf16[128,128], index: 4, kind: output, shape index: {}]  }
   0x1 LB: > { %s430_s16 = sadd.s32 4294967295, %s564_s15   ;;  %p434_p0 = scmp.ge.s32.totalorder %s564_s15, 1  ;;  %s564_s15 = sphi %s591_s15, %s14_s15  }
   0x2   : > { %p163_p1 = scmp.lt.s32.totalorder %s564_s15, 3 }
   0x4   : > { %p164_p2 = pnand %p434_p0, %p163_p1 }
   0x5   : > { %s435_s25 = sshll.u32 (!%p164_p2), %s430_s16, 3 }
   0x6   : > { %167 = sbr.rel (%p164_p2) target bundleno = 194 (0xc2), region = 36  ;;  %p190_p3 = scmp.lt.s32.totalorder (!%p164_p2), %s435_s25, 15 }
   0xb   : > { %v500_v0 = vld [vmem:[%s646_s1 + $0x38] sm:$0xff]  ;;  %v499_v1 = vld [vmem:[%s646_s1 + $0x30] sm:$0xff]  ;;  %v498_v2 = vld [vmem:[%s646_s1 + $0x28] sm:$0xff]  ;;  %s651_s25 = smov (!%p190_p3, %s435_s25), 15 }
   0xc   : > { %297 = vmatpush.bf16.msra.mxu0 %v500_v0  ;;  %524 = vmatpush.bf16.msra.mxu1 %v500_v0  ;;  %v497_v3 = vld [vmem:[%s646_s1 + $0x20] sm:$0xff]  ;;  %v496_v4 = vld [vmem:[%s646_s1 + $0x18] sm:$0xff]  ;;  %v495_v5 = vld [vmem:[%s646_s1 + $0x10] sm:$0xff]  ;;  %s436_s6 = sshll.u32 %s651_s25, 2 }
   0xd   : > { %525 = vmatpush.bf16.msra.mxu2 %v500_v0  ;;  %526 = vmatpush.bf16.msra.mxu3 %v500_v0  ;;  %v494_v6 = vld [vmem:[%s646_s1 + $0x8] sm:$0xff]  ;;  %v493_v7 = vld [vmem:[%s646_s1] sm:$0xff]  ;;  %s193_s11 = scalar_lea.vmem %s645_s0, %s436_s6  ;;  %s199_s19 = scalar_lea.vmem %s649_s4, %s436_s6 }
   0xe   : > { %v489_v8 = vld [vmem:[%s193_s11] sm:$0xff]  ;;  %v490_v9 = vld [vmem:[%s193_s11 + $0x8] sm:$0xff]  ;;  %v491_v10 = vld [vmem:[%s193_s11 + $0x10] sm:$0xff] }
   0xf   : > { %v492_v11 = vld [vmem:[%s193_s11 + $0x18] sm:$0xff]  ;;  %v556_v14 = vld [vmem:[%s647_s2] ss:$0 sm:$0xff] }
  0x10   : > { %298 = vmatpush.bf16.msra.mxu0 %v499_v1  ;;  %527 = vmatpush.bf16.msra.mxu1 %v499_v1  ;;  %v557_v16 = vld [vmem:[%s648_s3] ss:$0 sm:$0xff] }
  0x11   : > { %528 = vmatpush.bf16.msra.mxu2 %v499_v1  ;;  %529 = vmatpush.bf16.msra.mxu3 %v499_v1 }
  0x14   : > { %299 = vmatpush.bf16.msra.mxu0 %v498_v2  ;;  %530 = vmatpush.bf16.msra.mxu1 %v498_v2 }
  0x15   : > { %531 = vmatpush.bf16.msra.mxu2 %v498_v2  ;;  %532 = vmatpush.bf16.msra.mxu3 %v498_v2 }
  0x18   : > { %300 = vmatpush.bf16.msra.mxu0 %v497_v3  ;;  %533 = vmatpush.bf16.msra.mxu1 %v497_v3 }
  0x19   : > { %534 = vmatpush.bf16.msra.mxu2 %v497_v3  ;;  %535 = vmatpush.bf16.msra.mxu3 %v497_v3 }
  0x1c   : > { %301 = vmatpush.bf16.msra.mxu0 %v496_v4  ;;  %536 = vmatpush.bf16.msra.mxu1 %v496_v4 }
  0x1d   : > { %537 = vmatpush.bf16.msra.mxu2 %v496_v4  ;;  %538 = vmatpush.bf16.msra.mxu3 %v496_v4 }
  0x20   : > { %302 = vmatpush.bf16.msra.mxu0 %v495_v5  ;;  %539 = vmatpush.bf16.msra.mxu1 %v495_v5 }
  0x21   : > { %540 = vmatpush.bf16.msra.mxu2 %v495_v5  ;;  %541 = vmatpush.bf16.msra.mxu3 %v495_v5 }
  0x24   : > { %303 = vmatpush.bf16.msra.mxu0 %v494_v6  ;;  %542 = vmatpush.bf16.msra.mxu1 %v494_v6 }
  0x25   : > { %543 = vmatpush.bf16.msra.mxu2 %v494_v6  ;;  %544 = vmatpush.bf16.msra.mxu3 %v494_v6 }
  0x28   : > { %304 = vmatpush.bf16.msra.mxu0 %v493_v7  ;;  %545 = vmatpush.bf16.msra.mxu1 %v493_v7 }
  0x29   : > { %546 = vmatpush.bf16.msra.mxu2 %v493_v7  ;;  %547 = vmatpush.bf16.msra.mxu3 %v493_v7 }
  0x2b   : > { %305 = vmatmul.bf16.vlgmr.msra.gmra.mxu0 %v489_v8  ;;  %310 = vmatmul.bf16.vlgmr.msra.gmra.mxu1 %v490_v9 }
  0x2c   : > { %315 = vmatmul.bf16.vlgmr.msra.gmra.mxu2 %v491_v10  ;;  %320 = vmatmul.bf16.vlgmr.msra.gmra.mxu3 %v492_v11 }
  0xa8   : > { %v306_v12 = vpop.f32.mrf.mxu0  ;;  %v311_v13 = vpop.f32.mrf.mxu1 }
  0xa9   : > { %v330_v15 = vmul.f32 %v556_v14, %v306_v12  ;;  %v332_v17 = vmul.f32 %v556_v14, %v311_v13 }
  0xab   : > { %v342_v22 = vadd.f32 %v557_v16, %v330_v15  ;;  %v344_v23 = vadd.f32 %v557_v16, %v332_v17 }
  0xad   : > { %v350_v30 = vmax.f32 %v342_v22, 0.0  ;;  %v352_v31 = vmax.f32 %v344_v23, 0.0 }
  0xaf   : > { %v316_v18 = vpop.f32.mrf.mxu2  ;;  %v321_v19 = vpop.f32.mrf.mxu3 }
  0xb0   : > { %v308_v20 = vpop.f32.mrf.mxu0  ;;  %v313_v21 = vpop.f32.mrf.mxu1  ;;  %v334_v28 = vmul.f32 %v556_v14, %v316_v18  ;;  %v336_v29 = vmul.f32 %v556_v14, %v321_v19 }
  0xb1   : > { %v331_v24 = vmul.f32 %v556_v14, %v308_v20  ;;  %v333_v25 = vmul.f32 %v556_v14, %v313_v21 }
  0xb2   : > { %v346_v38 = vadd.f32 %v557_v16, %v334_v28  ;;  %v348_v39 = vadd.f32 %v557_v16, %v336_v29 }
  0xb3   : > { %v343_v26 = vadd.f32 %v557_v16, %v331_v24  ;;  %v345_v27 = vadd.f32 %v557_v16, %v333_v25 }
  0xb4   : > { %v354_v44 = vmax.f32 %v346_v38, 0.0  ;;  %v356_v45 = vmax.f32 %v348_v39, 0.0 }
  0xb5   : > { %v351_v32 = vmax.f32 %v343_v26, 0.0  ;;  %v353_v33 = vmax.f32 %v345_v27, 0.0 }
  0xb7   : > { %v504_v34 = vpack.c.bf16 %v351_v32, %v350_v30  ;;  %v509_v35 = vpack.c.bf16 %v353_v33, %v352_v31  ;;  %v318_v36 = vpop.f32.mrf.mxu2  ;;  %v323_v37 = vpop.f32.mrf.mxu3 }
  0xb8   : > { %v335_v40 = vmul.f32 %v556_v14, %v318_v36  ;;  %v337_v41 = vmul.f32 %v556_v14, %v323_v37 }
  0xb9   : > { %505 = vst [vmem:[%s199_s19] sm:$0xff] %v504_v34  }
  0xba   : > { %521 = vst [vmem:[%s199_s19 + $0x8] sm:$0xff] %v509_v35   ;;  %v347_v42 = vadd.f32 %v557_v16, %v335_v40  ;;  %v349_v43 = vadd.f32 %v557_v16, %v337_v41 }
  0xbc   : > { %v355_v46 = vmax.f32 %v347_v42, 0.0  ;;  %v357_v47 = vmax.f32 %v349_v43, 0.0 }
  0xbe   : > { %v514_v48 = vpack.c.bf16 %v355_v46, %v354_v44  ;;  %v519_v49 = vpack.c.bf16 %v357_v47, %v356_v45 }
  0xc0   : > { %522 = vst [vmem:[%s199_s19 + $0x10] sm:$0xff] %v514_v48  }
  0xc1   : > { %523 = vst [vmem:[%s199_s19 + $0x18] sm:$0xff] %v519_v49  }
  0xc2 PF: > { %s14_s15 = sadd.s32 1, %s564_s15  }
  0xc3   : > { %p11_p4 = scmp.ge.s32.totalorder %s14_s15, 4  }
  0xc5   :  { %13 = sbr.rel (!%p11_p4) target bundleno = 1 (0x1), region = 66 }

</bundles_post_ra>
